<compile_context>
chip_gen: v7x
topology: tpu7x:2x2x1
jax: 0.10.0
libtpu: 0.0.40
codegen_flags: <defaults>
</compile_context>

<pallas_src>
import functools
import jax
import jax.numpy as jnp
from jax import lax
from jax.experimental import pallas as pl
from jax.experimental.pallas import tpu as pltpu

LN_EPS = 1e-5        # torch nn.LayerNorm default
ATTN_EPS = 1e-6      # eps in softmax_with_policy


def _layernorm(v, g, b):
    mu = jnp.mean(v, axis=-1, keepdims=True)
    var = jnp.mean((v - mu) ** 2, axis=-1, keepdims=True)
    return (v - mu) * lax.rsqrt(var + LN_EPS) * g + b


# --------------------------- pass 1: LN1 + QKV projection ---------------------------
def _qkv_kernel(x_ref, n1g_ref, n1b_ref, wq_ref, wk_ref, wv_ref,
                q_ref, k_ref, v_ref):
    x = x_ref[0]                                                     # (T, C) f32
    y = _layernorm(x, n1g_ref[...], n1b_ref[...]).astype(jnp.bfloat16)
    # bf16 operands, f32 MXU accumulation, bf16 lane-dense stores (qkv_bias=False).
    q_ref[0] = jnp.dot(y, wq_ref[...], preferred_element_type=jnp.float32).astype(jnp.bfloat16)
    k_ref[0] = jnp.dot(y, wk_ref[...], preferred_element_type=jnp.float32).astype(jnp.bfloat16)
    v_ref[0] = jnp.dot(y, wv_ref[...], preferred_element_type=jnp.float32).astype(jnp.bfloat16)


# ------------- pass 2: attention + proj + residual + LN2 + MLP + residual -------------
def _attn_mlp_kernel(*refs, scale, tile_n, use_policy):
    if use_policy:
        (x_ref, q_ref, k_ref, v_ref, pol_ref,
         projw_ref, projb_ref, n2g_ref, n2b_ref,
         fc1w_ref, fc1b_ref, fc2w_ref, fc2b_ref, o_ref) = refs
    else:
        (x_ref, q_ref, k_ref, v_ref,
         projw_ref, projb_ref, n2g_ref, n2b_ref,
         fc1w_ref, fc1b_ref, fc2w_ref, fc2b_ref, o_ref) = refs
        pol_ref = None

    x = x_ref[0]                                   # (T, C)  f32
    q = q_ref[0]                                   # (H, T, hd)  bf16 (query tile)
    k = k_ref[0]                                   # (H, N, hd)  bf16 (all keys)
    v = v_ref[0]                                   # (H, N, hd)  bf16
    T = q.shape[1]
    N = k.shape[1]

    # Batched over the leading head axis: no per-head lane slicing, no explicit k.T.
    s = jnp.einsum("htd,hnd->htn", q, k,
                   preferred_element_type=jnp.float32) * scale       # (H, T, N) f32
    m = jnp.max(s, axis=-1, keepdims=True)
    e = jnp.exp(s - m)

    if use_policy:
        pol = pol_ref[0]                                             # (1, N) f32
        q0 = pl.program_id(1) * tile_n                               # global row offset of this tile
        row = lax.broadcasted_iota(jnp.int32, (T, N), 0) + q0
        col = lax.broadcasted_iota(jnp.int32, (T, N), 1)
        eye = (row == col).astype(jnp.float32)
        attn_policy = pol + (1.0 - pol) * eye                        # (T, N)
        e = e * attn_policy[None, :, :]
        denom = jnp.sum(e, axis=-1, keepdims=True) + ATTN_EPS
        probs = (e + ATTN_EPS / N) * pl.reciprocal(denom, approx=True)
    else:
        denom = jnp.sum(e, axis=-1, keepdims=True)
        probs = e * pl.reciprocal(denom, approx=True)

    ctx = jnp.einsum("htn,hnd->htd", probs.astype(jnp.bfloat16), v,
                     preferred_element_type=jnp.float32)             # (H, T, hd) f32
    # Per-head projection summed over heads == concat(heads) @ proj_w (no concatenate).
    parts = jnp.einsum("htd,hdc->htc", ctx.astype(jnp.bfloat16), projw_ref[...],
                       preferred_element_type=jnp.float32)           # (H, T, C)
    attn_out = jnp.sum(parts, axis=0) + projb_ref[...]               # (T, C) f32
    x1 = x + attn_out                                                # residual (drop_path = Identity)

    # ----- norm2 + MLP (elementwise math stays f32; only dot operands are bf16) -----
    y2 = _layernorm(x1, n2g_ref[...], n2b_ref[...]).astype(jnp.bfloat16)
    h1 = jnp.dot(y2, fc1w_ref[...], preferred_element_type=jnp.float32) + fc1b_ref[...]
    h1 = jax.nn.gelu(h1, approximate=False)        # nn.GELU default = exact (erf) GELU
    h2 = jnp.dot(h1.astype(jnp.bfloat16), fc2w_ref[...],
                 preferred_element_type=jnp.float32) + fc2b_ref[...]
    o_ref[0] = x1 + h2


def _pick_tile(n, target=256):
    """Largest token tile <= target that divides N, preferring nice sublane alignment."""
    if n <= target:
        return n
    for align in (128, 64, 32, 16, 8):
        t = target - (target % align)
        while t >= align:
            if n % t == 0:
                return t
            t -= align
    return n


def block_forward(x, params, policy=None, *, num_heads):
    B, N, C = x.shape
    H = params["fc1_w"].shape[1]
    hd = C // num_heads
    scale = hd ** -0.5                      # qk_scale=None -> head_dim ** -0.5
    use_policy = policy is not None

    T = _pick_tile(N)
    n_tiles = N // T

    f32, bf16 = jnp.float32, jnp.bfloat16
    x = x.astype(f32)
    row = lambda a: a.reshape(1, -1).astype(f32)

    # Weight layout plumbing done once, outside the kernels (bf16 halves weight DMA/VMEM).
    qkv_w = params["qkv_w"].astype(bf16)
    wq, wk, wv = qkv_w[:, :C], qkv_w[:, C:2 * C], qkv_w[:, 2 * C:]
    proj_w3 = params["proj_w"].astype(bf16).reshape(num_heads, hd, C)
    fc1_w = params["fc1_w"].astype(bf16)
    fc2_w = params["fc2_w"].astype(bf16)

    cparams = pltpu.CompilerParams(
        dimension_semantics=("parallel", "parallel"),
        vmem_limit_bytes=64 * 1024 * 1024,   # explicit budget; weights are grid-invariant (DMA'd once)
    )

    tok_tile = lambda: pl.BlockSpec((1, T, C), lambda b, t: (b, t, 0))

    def whole(shape):
        zeros = (0,) * len(shape)
        return pl.BlockSpec(shape, lambda b, t: zeros)

    # ----------------------------- pass 1: LN1 + QKV -----------------------------
    qkv_cost = pl.CostEstimate(
        flops=int(2 * B * N * C * 3 * C),
        transcendentals=0,
        bytes_accessed=int(B * N * C * 4 + 3 * C * C * 2 + 3 * B * N * C * 2),
    )
    q, k, v = pl.pallas_call(
        _qkv_kernel,
        out_shape=[jax.ShapeDtypeStruct((B, N, C), bf16)] * 3,
        grid=(B, n_tiles),
        in_specs=[tok_tile(),
                  whole((1, C)), whole((1, C)),
                  whole((C, C)), whole((C, C)), whole((C, C))],
        out_specs=[tok_tile(), tok_tile(), tok_tile()],
        compiler_params=cparams,
        cost_estimate=qkv_cost,
    )(x, row(params["norm1_g"]), row(params["norm1_b"]), wq, wk, wv)

    # Head-major relayout in XLA: [B, N, C] -> [B, num_heads, N, hd]
    to_heads = lambda t: t.reshape(B, N, num_heads, hd).transpose(0, 2, 1, 3)
    qh, kh, vh = to_heads(q), to_heads(k), to_heads(v)

    # ------------------ pass 2: attention + proj + residual + MLP ------------------
    kernel = functools.partial(_attn_mlp_kernel, scale=scale, tile_n=T,
                               use_policy=use_policy)
    in_specs = [
        tok_tile(),                                                        # x (residual)
        pl.BlockSpec((1, num_heads, T, hd), lambda b, t: (b, 0, t, 0)),    # q  (query tile)
        pl.BlockSpec((1, num_heads, N, hd), lambda b, t: (b, 0, 0, 0)),    # k  (all keys)
        pl.BlockSpec((1, num_heads, N, hd), lambda b, t: (b, 0, 0, 0)),    # v
    ]
    args = [x, qh, kh, vh]
    if use_policy:                                   # no dummy policy DMA when policy is None
        in_specs.append(pl.BlockSpec((1, 1, N), lambda b, t: (b, 0, 0)))
        args.append(policy.reshape(B, 1, N).astype(f32))
    in_specs += [
        whole((num_heads, hd, C)), whole((1, C)),    # proj weight (head-major) / bias
        whole((1, C)), whole((1, C)),                # norm2 gamma/beta
        whole((C, H)), whole((1, H)),                # fc1 weight/bias
        whole((H, C)), whole((1, C)),                # fc2 weight/bias
    ]
    args += [proj_w3, row(params["proj_b"]),
             row(params["norm2_g"]), row(params["norm2_b"]),
             fc1_w, row(params["fc1_b"]),
             fc2_w, row(params["fc2_b"])]

    attn_cost = pl.CostEstimate(
        flops=int(4 * B * num_heads * N * N * hd      # scores + ctx
                  + 2 * B * N * C * C                 # proj
                  + 4 * B * N * C * H),               # fc1 + fc2
        transcendentals=int(B * num_heads * N * N + B * N * H),
        bytes_accessed=int(2 * B * N * C * 4 + 3 * B * N * C * 2
                           + (C * C + 2 * C * H) * 2),
    )
    return pl.pallas_call(
        kernel,
        out_shape=jax.ShapeDtypeStruct((B, N, C), f32),
        grid=(B, n_tiles),
        in_specs=in_specs,
        out_specs=tok_tile(),
        compiler_params=cparams,
        cost_estimate=attn_cost,
    )(*args)


# ---------------- pure-JAX reference (same math as the PyTorch module, f32) ----------------
def block_ref(x, params, policy=None, *, num_heads):
    B, N, C = x.shape
    hd = C // num_heads
    scale = hd ** -0.5
    y = _layernorm(x, params["norm1_g"], params["norm1_b"])
    qkv = y @ params["qkv_w"]
    q, k, v = qkv[..., :C], qkv[..., C:2 * C], qkv[..., 2 * C:]
    rs = lambda t: t.reshape(B, N, num_heads, hd).transpose(0, 2, 1, 3)
    q, k, v = rs(q), rs(k), rs(v)
    attn = jnp.einsum("bhnd,bhmd->bhnm", q, k) * scale
    if policy is None:
        attn = jax.nn.softmax(attn, axis=-1)
    else:
        ap = policy.reshape(B, 1, 1, N)
        eye = jnp.eye(N, dtype=jnp.float32).reshape(1, 1, N, N)
        ap = ap + (1.0 - ap) * eye
        m = jnp.max(attn, axis=-1, keepdims=True)
        e = jnp.exp(attn - m) * ap
        attn = (e + ATTN_EPS / N) / (jnp.sum(e, axis=-1, keepdims=True) + ATTN_EPS)
    o = jnp.einsum("bhnm,bhmd->bhnd", attn, v).transpose(0, 2, 1, 3).reshape(B, N, C)
    x1 = x + (o @ params["proj_w"] + params["proj_b"])
    y2 = _layernorm(x1, params["norm2_g"], params["norm2_b"])
    h1 = jax.nn.gelu(y2 @ params["fc1_w"] + params["fc1_b"], approximate=False)
    return x1 + (h1 @ params["fc2_w"] + params["fc2_b"])


if __name__ == "__main__":
    B, N, C = 2, 8, 32
    num_heads = 4
    mlp_ratio = 4.0
    H = int(C * mlp_ratio)

    key = jax.random.PRNGKey(0)
    ks = jax.random.split(key, 8)
    params = {
        "norm1_g": jnp.ones((C,), jnp.float32),
        "norm1_b": jnp.zeros((C,), jnp.float32),
        "qkv_w": 0.02 * jax.random.normal(ks[0], (C, 3 * C), jnp.float32),
        "proj_w": 0.02 * jax.random.normal(ks[1], (C, C), jnp.float32),
        "proj_b": jnp.zeros((C,), jnp.float32),
        "norm2_g": jnp.ones((C,), jnp.float32),
        "norm2_b": jnp.zeros((C,), jnp.float32),
        "fc1_w": 0.02 * jax.random.normal(ks[2], (C, H), jnp.float32),
        "fc1_b": jnp.zeros((H,), jnp.float32),
        "fc2_w": 0.02 * jax.random.normal(ks[3], (H, C), jnp.float32),
        "fc2_b": jnp.zeros((C,), jnp.float32),
    }

    x = jax.random.normal(ks[4], (B, N, C), jnp.float32)
    policy = (jax.random.uniform(ks[5], (B, N, 1)) > 0.3).astype(jnp.float32)

    # bf16 MXU operands + approx reciprocal in softmax -> tolerance loosened vs the f32 reference.
    ATOL, RTOL = 2e-2, 2e-2

    # policy path
    out_p = jax.block_until_ready(block_forward(x, params, policy, num_heads=num_heads))
    ref_p = block_ref(x, params, policy, num_heads=num_heads)
    assert jnp.allclose(out_p, ref_p, atol=ATOL, rtol=RTOL), "policy path mismatch"

    # policy=None path (plain softmax; no policy input is DMA'd in this path)
    out_n = jax.block_until_ready(block_forward(x, params, None, num_heads=num_heads))
    ref_n = block_ref(x, params, None, num_heads=num_heads)
    assert jnp.allclose(out_n, ref_n, atol=ATOL, rtol=RTOL), "no-policy path mismatch"

    print("KERNEL_OK")
</pallas_src>

<mosaic_0001>
module attributes {stable_mosaic.version = 11 : i64} {
  func.func @_qkv_kernel(%arg0: i32, %arg1: i32, %arg2: memref<1x8x32xf32, #tpu.memory_space<vmem>>, %arg3: memref<1x32xf32, #tpu.memory_space<vmem>>, %arg4: memref<1x32xf32, #tpu.memory_space<vmem>>, %arg5: memref<32x32xbf16, #tpu.memory_space<vmem>>, %arg6: memref<32x32xbf16, #tpu.memory_space<vmem>>, %arg7: memref<32x32xbf16, #tpu.memory_space<vmem>>, %arg8: memref<1x8x32xbf16, #tpu.memory_space<vmem>>, %arg9: memref<1x8x32xbf16, #tpu.memory_space<vmem>>, %arg10: memref<1x8x32xbf16, #tpu.memory_space<vmem>>) attributes {dimension_semantics = [#tpu.dimension_semantics<parallel>, #tpu.dimension_semantics<parallel>], iteration_bounds = array<i64: 2, 1>, scalar_prefetch = 0 : i64, scratch_operands = 0 : i64, tpu.core_type = #tpu.core_type<tc>, window_params = [{transform_indices = @transform_0, window_bounds = array<i64: 1, 8, 32>}, {pipeline_mode = #tpu.pipeline_mode<synchronous>, transform_indices = @transform_1, window_bounds = array<i64: 1, 32>}, {pipeline_mode = #tpu.pipeline_mode<synchronous>, transform_indices = @transform_2, window_bounds = array<i64: 1, 32>}, {pipeline_mode = #tpu.pipeline_mode<synchronous>, transform_indices = @transform_3, window_bounds = array<i64: 32, 32>}, {pipeline_mode = #tpu.pipeline_mode<synchronous>, transform_indices = @transform_4, window_bounds = array<i64: 32, 32>}, {pipeline_mode = #tpu.pipeline_mode<synchronous>, transform_indices = @transform_5, window_bounds = array<i64: 32, 32>}, {transform_indices = @transform_6, window_bounds = array<i64: 1, 8, 32>}, {transform_indices = @transform_7, window_bounds = array<i64: 1, 8, 32>}, {transform_indices = @transform_8, window_bounds = array<i64: 1, 8, 32>}]} {
    %c0 = arith.constant 0 : index
    %c0_0 = arith.constant 0 : index
    %c0_1 = arith.constant 0 : index
    %0 = vector.load %arg2[%c0, %c0_0, %c0_1] : memref<1x8x32xf32, #tpu.memory_space<vmem>>, vector<1x8x32xf32>
    %1 = vector.shape_cast %0 : vector<1x8x32xf32> to vector<8x32xf32>
    %c0_2 = arith.constant 0 : index
    %c0_3 = arith.constant 0 : index
    %2 = vector.load %arg3[%c0_2, %c0_3] : memref<1x32xf32, #tpu.memory_space<vmem>>, vector<1x32xf32>
    %c0_4 = arith.constant 0 : index
    %c0_5 = arith.constant 0 : index
    %3 = vector.load %arg4[%c0_4, %c0_5] : memref<1x32xf32, #tpu.memory_space<vmem>>, vector<1x32xf32>
    %cst = arith.constant dense<0.000000e+00> : vector<8xf32>
    %4 = vector.multi_reduction <add>, %1, %cst [1] : vector<8x32xf32> to vector<8xf32>
    %5 = vector.shape_cast %4 : vector<8xf32> to vector<8x1xf32>
    %cst_6 = arith.constant 3.200000e+01 : f32
    %6 = vector.broadcast %cst_6 : f32 to vector<8x1xf32>
    %7 = arith.divf %5, %6 : vector<8x1xf32>
    %8 = vector.broadcast %7 : vector<8x1xf32> to vector<8x32xf32>
    %9 = arith.subf %1, %8 : vector<8x32xf32>
    %10 = arith.mulf %9, %9 : vector<8x32xf32>
    %cst_7 = arith.constant dense<0.000000e+00> : vector<8xf32>
    %11 = vector.multi_reduction <add>, %10, %cst_7 [1] : vector<8x32xf32> to vector<8xf32>
    %12 = vector.shape_cast %11 : vector<8xf32> to vector<8x1xf32>
    %cst_8 = arith.constant 3.200000e+01 : f32
    %13 = vector.broadcast %cst_8 : f32 to vector<8x1xf32>
    %14 = arith.divf %12, %13 : vector<8x1xf32>
    %15 = vector.broadcast %7 : vector<8x1xf32> to vector<8x32xf32>
    %16 = arith.subf %1, %15 : vector<8x32xf32>
    %cst_9 = arith.constant 9.99999974E-6 : f32
    %17 = vector.broadcast %cst_9 : f32 to vector<8x1xf32>
    %18 = arith.addf %14, %17 : vector<8x1xf32>
    %19 = math.rsqrt %18 : vector<8x1xf32>
    %20 = vector.broadcast %19 : vector<8x1xf32> to vector<8x32xf32>
    %21 = arith.mulf %16, %20 : vector<8x32xf32>
    %22 = vector.broadcast %2 : vector<1x32xf32> to vector<8x32xf32>
    %23 = arith.mulf %21, %22 : vector<8x32xf32>
    %24 = vector.broadcast %3 : vector<1x32xf32> to vector<8x32xf32>
    %25 = arith.addf %23, %24 : vector<8x32xf32>
    %26 = arith.truncf %25 : vector<8x32xf32> to vector<8x32xbf16>
    %c0_10 = arith.constant 0 : index
    %c0_11 = arith.constant 0 : index
    %27 = vector.load %arg5[%c0_10, %c0_11] : memref<32x32xbf16, #tpu.memory_space<vmem>>, vector<32x32xbf16>
    %cst_12 = arith.constant dense<0.000000e+00> : vector<8x32xf32>
    %28 = tpu.matmul %26, %27, %cst_12 {dimension_numbers = #tpu.dot_dimension_numbers<[1], [0], [0], [1], [0, 0, 1, 1], [], []>} : vector<8x32xbf16>, vector<32x32xbf16>, vector<8x32xf32> -> vector<8x32xf32>
    %29 = arith.truncf %28 : vector<8x32xf32> to vector<8x32xbf16>
    %c0_13 = arith.constant 0 : index
    %c0_14 = arith.constant 0 : index
    %c0_15 = arith.constant 0 : index
    %30 = vector.load %arg8[%c0_13, %c0_14, %c0_15] : memref<1x8x32xbf16, #tpu.memory_space<vmem>>, vector<1x8x32xbf16>
    %31 = vector.shape_cast %30 : vector<1x8x32xbf16> to vector<8x32xbf16>
    %32 = vector.shape_cast %29 : vector<8x32xbf16> to vector<1x8x32xbf16>
    tpu.vector_store %arg8[%c0_13, %c0_14, %c0_15], %32 {strides = array<i32>} : memref<1x8x32xbf16, #tpu.memory_space<vmem>>, vector<1x8x32xbf16>,
    %c0_16 = arith.constant 0 : index
    %c0_17 = arith.constant 0 : index
    %33 = vector.load %arg6[%c0_16, %c0_17] : memref<32x32xbf16, #tpu.memory_space<vmem>>, vector<32x32xbf16>
    %cst_18 = arith.constant dense<0.000000e+00> : vector<8x32xf32>
    %34 = tpu.matmul %26, %33, %cst_18 {dimension_numbers = #tpu.dot_dimension_numbers<[1], [0], [0], [1], [0, 0, 1, 1], [], []>} : vector<8x32xbf16>, vector<32x32xbf16>, vector<8x32xf32> -> vector<8x32xf32>
    %35 = arith.truncf %34 : vector<8x32xf32> to vector<8x32xbf16>
    %c0_19 = arith.constant 0 : index
    %c0_20 = arith.constant 0 : index
    %c0_21 = arith.constant 0 : index
    %36 = vector.load %arg9[%c0_19, %c0_20, %c0_21] : memref<1x8x32xbf16, #tpu.memory_space<vmem>>, vector<1x8x32xbf16>
    %37 = vector.shape_cast %36 : vector<1x8x32xbf16> to vector<8x32xbf16>
    %38 = vector.shape_cast %35 : vector<8x32xbf16> to vector<1x8x32xbf16>
    tpu.vector_store %arg9[%c0_19, %c0_20, %c0_21], %38 {strides = array<i32>} : memref<1x8x32xbf16, #tpu.memory_space<vmem>>, vector<1x8x32xbf16>,
    %c0_22 = arith.constant 0 : index
    %c0_23 = arith.constant 0 : index
    %39 = vector.load %arg7[%c0_22, %c0_23] : memref<32x32xbf16, #tpu.memory_space<vmem>>, vector<32x32xbf16>
    %cst_24 = arith.constant dense<0.000000e+00> : vector<8x32xf32>
    %40 = tpu.matmul %26, %39, %cst_24 {dimension_numbers = #tpu.dot_dimension_numbers<[1], [0], [0], [1], [0, 0, 1, 1], [], []>} : vector<8x32xbf16>, vector<32x32xbf16>, vector<8x32xf32> -> vector<8x32xf32>
    %41 = arith.truncf %40 : vector<8x32xf32> to vector<8x32xbf16>
    %c0_25 = arith.constant 0 : index
    %c0_26 = arith.constant 0 : index
    %c0_27 = arith.constant 0 : index
    %42 = vector.load %arg10[%c0_25, %c0_26, %c0_27] : memref<1x8x32xbf16, #tpu.memory_space<vmem>>, vector<1x8x32xbf16>
    %43 = vector.shape_cast %42 : vector<1x8x32xbf16> to vector<8x32xbf16>
    %44 = vector.shape_cast %41 : vector<8x32xbf16> to vector<1x8x32xbf16>
    tpu.vector_store %arg10[%c0_25, %c0_26, %c0_27], %44 {strides = array<i32>} : memref<1x8x32xbf16, #tpu.memory_space<vmem>>, vector<1x8x32xbf16>,
    return
  }
  func.func @transform_0(%arg0: i32, %arg1: i32) -> (i32, i32, i32) {
    %c0_i32 = arith.constant 0 : i32
    %c0_i32_0 = arith.constant 0 : i32
    return %arg0, %arg1, %c0_i32 : i32, i32, i32
  }
  func.func @transform_1(%arg0: i32, %arg1: i32) -> (i32, i32) {
    %c0_i32 = arith.constant 0 : i32
    %c0_i32_0 = arith.constant 0 : i32
    %c0_i32_1 = arith.constant 0 : i32
    return %c0_i32, %c0_i32_0 : i32, i32
  }
  func.func @transform_2(%arg0: i32, %arg1: i32) -> (i32, i32) {
    %c0_i32 = arith.constant 0 : i32
    %c0_i32_0 = arith.constant 0 : i32
    %c0_i32_1 = arith.constant 0 : i32
    return %c0_i32, %c0_i32_0 : i32, i32
  }
  func.func @transform_3(%arg0: i32, %arg1: i32) -> (i32, i32) {
    %c0_i32 = arith.constant 0 : i32
    %c0_i32_0 = arith.constant 0 : i32
    %c0_i32_1 = arith.constant 0 : i32
    return %c0_i32, %c0_i32_0 : i32, i32
  }
  func.func @transform_4(%arg0: i32, %arg1: i32) -> (i32, i32) {
    %c0_i32 = arith.constant 0 : i32
    %c0_i32_0 = arith.constant 0 : i32
    %c0_i32_1 = arith.constant 0 : i32
    return %c0_i32, %c0_i32_0 : i32, i32
  }
  func.func @transform_5(%arg0: i32, %arg1: i32) -> (i32, i32) {
    %c0_i32 = arith.constant 0 : i32
    %c0_i32_0 = arith.constant 0 : i32
    %c0_i32_1 = arith.constant 0 : i32
    return %c0_i32, %c0_i32_0 : i32, i32
  }
  func.func @transform_6(%arg0: i32, %arg1: i32) -> (i32, i32, i32) {
    %c0_i32 = arith.constant 0 : i32
    %c0_i32_0 = arith.constant 0 : i32
    return %arg0, %arg1, %c0_i32 : i32, i32, i32
  }
  func.func @transform_7(%arg0: i32, %arg1: i32) -> (i32, i32, i32) {
    %c0_i32 = arith.constant 0 : i32
    %c0_i32_0 = arith.constant 0 : i32
    return %arg0, %arg1, %c0_i32 : i32, i32, i32
  }
  func.func @transform_8(%arg0: i32, %arg1: i32) -> (i32, i32, i32) {
    %c0_i32 = arith.constant 0 : i32
    %c0_i32_0 = arith.constant 0 : i32
    return %arg0, %arg1, %c0_i32 : i32, i32, i32
  }
}

</mosaic_0001>

<bundles_post_ra>
// kernel: tpu_custom_call.1
= control target key start
LH: loop header
LB: loop body
LE: loop exit
PB: predicated region body
PF: predicated region fallthrough
CT: control target
= control target key end

     0   :  { %s1879_s0 = inlined_call_operand.hbm [shape: f32[2,8,32], index: 0, kind: input, shape index: {}]   ;;  %s1880_s1 = inlined_call_operand.hbm [shape: f32[1,32], index: 1, kind: input, shape index: {}]   ;;  %s1881_s2 = inlined_call_operand.hbm [shape: f32[1,32], index: 2, kind: input, shape index: {}]   ;;  %s1882_s3 = inlined_call_operand.hbm [shape: bf16[32,32], index: 3, kind: input, shape index: {}]   ;;  %s1883_s4 = inlined_call_operand.hbm [shape: bf16[32,32], index: 4, kind: input, shape index: {}]   ;;  %s1884_s5 = inlined_call_operand.hbm [shape: bf16[32,32], index: 5, kind: input, shape index: {}]   ;;  %s1885_s6 = inlined_call_operand.hbm [shape: bf16[2,8,32], index: 6, kind: output, shape index: {0}]   ;;  %s1886_s7 = inlined_call_operand.hbm [shape: bf16[2,8,32], index: 7, kind: output, shape index: {1}]   ;;  %s1887_s8 = inlined_call_operand.hbm [shape: bf16[2,8,32], index: 8, kind: output, shape index: {2}]  }
   0x1   :  { %1896 = sst [smem:[#allocation23_spill]] %s1880_s1 }
   0x2   :  { %1897 = sst [smem:[#allocation24_spill]] %s1881_s2 }
   0x3   :  { %1898 = sst [smem:[#allocation25_spill]] %s1882_s3 }
   0x4   :  { %14 = vsyncpa [#allocation3], 0 }
   0x5   :  { %16 = vsyncpa [#allocation3 + $0x1], 0 }
   0x6   :  { %17 = vsyncpa [#allocation6], 0 }
   0x7   :  { %18 = vsyncpa [#allocation9], 0 }
   0x8   :  { %19 = vsyncpa [#allocation12], 0 }
   0x9   :  { %20 = vsyncpa [#allocation4], 0 }
   0xa   :  { %22 = vsyncpa [#allocation4 + $0x1], 0 }
   0xb   :  { %23 = vsyncpa [#allocation15], 0 }
   0xc   :  { %25 = vsyncpa [#allocation15 + $0x1], 0  ;;  %s1477_s27 = smov 0   ;;  %s1479_s28 = smov 0  }
   0xd   :  { %s1481_s29 = smov 0   ;;  %s1483_s30 = smov 0  }
   0xe   :  { %s1485_s9 = smov 0   ;;  %s1487_s10 = smov 0  }
   0xf LB: > { %s1508_s11 = sadd.s32 4294967295, %s1417_s10   ;;  %p887_p0 = scmp.ge.s32.totalorder %s1417_s10, 1  ;;  %s1417_s10 = sphi %s1487_s10, %s31_s10   ;;  %s1413_s9 = sphi %s1485_s9, %s1928_s9   ;;  %s1409_s30 = sphi %s1483_s30, %s1927_s30   ;;  %s1405_s29 = sphi %s1481_s29, %s1926_s29   ;;  %s1401_s28 = sphi %s1479_s28, %s1925_s28   ;;  %s1397_s27 = sphi %s1477_s27, %s1924_s27  }
  0x10   : > { %p1888_p1 = scmp.eq.s32.totalorder %s1508_s11, 0  ;;  %p265_p2 = scmp.lt.s32.totalorder %s1417_s10, 3 }
  0x11   : > { %s1419_s13 = smov [#allocation5]   ;;  %s1420_s15 = smov [#allocation8]  }
  0x12   : > { %p1513_p3 = pnand %p887_p0, %p265_p2  ;;  %s278_s14 = sshll.u32 %s1419_s13, 4  ;;  %s279_s14 = int_to_ptr.vmem [resolvable:$true] %s278_s14 }
  0x13   : > { %s299_s16 = sshll.u32 %s1420_s15, 4  ;;  %s1421_s18 = smov [#allocation7]   ;;  %s1526_s16 = int_to_ptr.vmem [resolvable:$true] %s299_s16 }
  0x14   : > { %s1899_s12 = scalar_select %p1513_p3, 1, 0 }
  0x15   : > { %p986_p5 = pneg %p1513_p3  ;;  %s1528_s19 = sshll.u32 %s1421_s18, 4  ;;  %s290_s19 = int_to_ptr.vmem [resolvable:$true] %s1528_s19 }
  0x16   : > { %s1901_s1 = sld [smem:[#allocation23_spill]] }
  0x17   : > { %p1522_p6 = pnand %p986_p5, %p1888_p1 }
  0x19   : > { %p1538_p8 = pneg %p1522_p6 }
  0x1c   : > { %s1093_s22 = scalar_lea.hbm %s1901_s1, 16 }
  0x1d   : > { %p1094_p7 = scmp.ne.s32.totalorder %s1901_s1, %s1093_s22  ;;  %p1100_p11 = scmp.lt.u32.totalorder %s1093_s22, %s1901_s1 }
  0x1f   : > { %p1096_p9 = pnand %p1538_p8, %p1094_p7 }
  0x21   : > { %p1097_p10 = pneg %p1096_p9 }
  0x23   : > { %p1102_p12 = pnand %p1100_p11, %p1097_p10 }
  0x25   : > { %1105 = shalt.err (!%p1102_p12)
}
  0x26   : > { %s1106_s15 = scalar_lea.vmem %s279_s14, 16  ;;  %s1113_s18 = scalar_lea.vmem %s279_s14, 32 }
  0x27   : > { %p1107_p13 = scmp.ne.s32.totalorder %s279_s14, %s1106_s15  ;;  %p1114_p5 = scmp.lt.s32.totalorder %s279_s14, %s279_s14 }
  0x28   : > { %p1115_p4 = scmp.lt.s32.totalorder %s1113_s18, %s1106_s15 }
  0x29   : > { %p1109_p0 = pnand %p1107_p13, %p1538_p8 }
  0x2a   : > { %p1116_p1 = por %p1115_p4, %p1114_p5 }
  0x2b   : > { %p1110_p2 = pneg %p1109_p0 }
  0x2d   : > { %p1117_p3 = pnand %p1116_p1, %p1110_p2 }
  0x2f   : > { %1120 = shalt.err (!%p1117_p3)
}
  0x30   : > { %989 = dma.hbm_to_vmem [thread:$0]  (!%p1522_p6), %s1901_s1, 16, %s279_s14, [#allocation6]  }
  0x31   : > { %s1903_s3 = sld [smem:[#allocation25_spill]] }
  0x37   : > { %s1121_s24 = scalar_lea.hbm %s1903_s3, 256 }
  0x38   : > { %p1122_p7 = scmp.ne.s32.totalorder %s1903_s3, %s1121_s24  ;;  %p1128_p1 = scmp.lt.u32.totalorder %s1121_s24, %s1903_s3 }
  0x3a   : > { %p1124_p9 = pnand %p1122_p7, %p1538_p8 }
  0x3c   : > { %p1125_p4 = pneg %p1124_p9 }
  0x3e   : > { %p1130_p3 = pnand %p1128_p1, %p1125_p4 }
  0x40   : > { %1133 = shalt.err (!%p1130_p3)
}
  0x41   : > { %s1134_s14 = scalar_lea.vmem %s1526_s16, 256  ;;  %p1142_p13 = scmp.lt.s32.totalorder %s1526_s16, %s1526_s16 }
  0x42   : > { %p1135_p10 = scmp.ne.s32.totalorder %s1526_s16, %s1134_s14  ;;  %p1143_p0 = scmp.lt.s32.totalorder %s1134_s14, %s1134_s14 }
  0x44   : > { %p1137_p11 = pnand %p1135_p10, %p1538_p8  ;;  %p1144_p2 = por %p1143_p0, %p1142_p13 }
  0x46   : > { %p1138_p12 = pneg %p1137_p11 }
  0x48   : > { %p1145_p5 = pnand %p1144_p2, %p1138_p12 }
  0x4a   : > { %1148 = shalt.err (!%p1145_p5)
}
  0x4b   : > { %s1890_s20 = smov 64   ;;  %s1892_s21 = smov 4  }
  0x4c   : > { %995 = dma.hbm_to_vmem [thread:$0]  (!%p1522_p6), %s1903_s3, 256, %s1526_s16, [#allocation9], %s1890_s20, %s1890_s20, %s1892_s21  }
  0x4d   : > { %s1904_s2 = sld [smem:[#allocation24_spill]] }
  0x53   : > { %s1149_s13 = scalar_lea.hbm %s1904_s2, 16 }
  0x54   : > { %p1150_p7 = scmp.ne.s32.totalorder %s1904_s2, %s1149_s13  ;;  %p1156_p1 = scmp.lt.u32.totalorder %s1149_s13, %s1904_s2 }
  0x56   : > { %p1152_p9 = pnand %p1150_p7, %p1538_p8 }
  0x58   : > { %p1153_p4 = pneg %p1152_p9 }
  0x5a   : > { %p1158_p3 = pnand %p1156_p1, %p1153_p4 }
  0x5c   : > { %1161 = shalt.err (!%p1158_p3)
}
  0x5d   : > { %s1162_s22 = scalar_lea.vmem %s290_s19, 16  ;;  %s1169_s16 = scalar_lea.vmem %s290_s19, 32 }
  0x5e   : > { %p1163_p10 = scmp.ne.s32.totalorder %s290_s19, %s1162_s22  ;;  %p1170_p13 = scmp.lt.s32.totalorder %s290_s19, %s290_s19 }
  0x5f   : > { %p1171_p0 = scmp.lt.s32.totalorder %s1169_s16, %s1162_s22 }
  0x60   : > { %p1165_p11 = pnand %p1163_p10, %p1538_p8 }
  0x61   : > { %p1172_p2 = por %p1171_p0, %p1170_p13 }
  0x62   : > { %p1166_p12 = pneg %p1165_p11 }
  0x64   : > { %p1173_p5 = pnand %p1172_p2, %p1166_p12 }
  0x66   : > { %1176 = shalt.err (!%p1173_p5)
}
  0x67   : > { %992 = dma.hbm_to_vmem [thread:$0]  (!%p1522_p6), %s1904_s2, 16, %s290_s19, [#allocation6]  }
  0x68   : > { %s1424_s1 = smov [#allocation10]   ;;  %s1425_s13 = smov [#allocation11]  }
  0x69   : > { %s312_s26 = sshll.u32 %s1424_s1, 4  ;;  %s325_s15 = sshll.u32 %s1425_s13, 4  ;;  %s313_s26 = int_to_ptr.vmem [resolvable:$true] %s312_s26  ;;  %s326_s15 = int_to_ptr.vmem [resolvable:$true] %s325_s15 }
  0x6a   : > { %s1177_s20 = scalar_lea.hbm %s1883_s4, 256 }
  0x6b   : > { %p1178_p7 = scmp.ne.s32.totalorder %s1883_s4, %s1177_s20  ;;  %p1184_p1 = scmp.lt.u32.totalorder %s1177_s20, %s1883_s4 }
  0x6d   : > { %p1180_p9 = pnand %p1178_p7, %p1538_p8 }
  0x6f   : > { %p1181_p4 = pneg %p1180_p9 }
  0x71   : > { %p1186_p3 = pnand %p1184_p1, %p1181_p4 }
  0x73   : > { %1189 = shalt.err (!%p1186_p3)
}
  0x74   : > { %s1190_s19 = scalar_lea.vmem %s313_s26, 256  ;;  %p1198_p13 = scmp.lt.s32.totalorder %s313_s26, %s313_s26 }
  0x75   : > { %p1191_p10 = scmp.ne.s32.totalorder %s313_s26, %s1190_s19  ;;  %p1199_p0 = scmp.lt.s32.totalorder %s1190_s19, %s1190_s19 }
  0x77   : > { %p1193_p11 = pnand %p1191_p10, %p1538_p8  ;;  %p1200_p2 = por %p1199_p0, %p1198_p13 }
  0x79   : > { %p1194_p12 = pneg %p1193_p11 }
  0x7b   : > { %p1201_p5 = pnand %p1200_p2, %p1194_p12 }
  0x7d   : > { %1204 = shalt.err (!%p1201_p5)
}
  0x7e   : > { %s1905_s24 = smov 4   ;;  %s1906_s1 = smov 64  }
  0x7f   : > { %998 = dma.hbm_to_vmem [thread:$0]  (!%p1522_p6), %s1883_s4, 256, %s313_s26, [#allocation9], %s1906_s1, %s1906_s1, %s1905_s24  }
  0x80   : > { %s1205_s14 = scalar_lea.hbm %s1884_s5, 256 }
  0x81   : > { %p1206_p7 = scmp.ne.s32.totalorder %s1884_s5, %s1205_s14  ;;  %p1212_p1 = scmp.lt.u32.totalorder %s1205_s14, %s1884_s5 }
  0x83   : > { %p1208_p9 = pnand %p1206_p7, %p1538_p8 }
  0x85   : > { %p1209_p4 = pneg %p1208_p9 }
  0x87   : > { %p1214_p3 = pnand %p1212_p1, %p1209_p4 }
  0x89   : > { %1217 = shalt.err (!%p1214_p3)
}
  0x8a   : > { %s1218_s21 = scalar_lea.vmem %s326_s15, 256  ;;  %p1226_p13 = scmp.lt.s32.totalorder %s326_s15, %s326_s15 }
  0x8b   : > { %p1219_p10 = scmp.ne.s32.totalorder %s326_s15, %s1218_s21  ;;  %p1227_p0 = scmp.lt.s32.totalorder %s1218_s21, %s1218_s21 }
  0x8d   : > { %p1221_p11 = pnand %p1219_p10, %p1538_p8  ;;  %p1228_p2 = por %p1227_p0, %p1226_p13 }
  0x8f   : > { %p1222_p12 = pneg %p1221_p11 }
  0x91   : > { %p1229_p5 = pnand %p1228_p2, %p1222_p12 }
  0x93   : > { %1232 = shalt.err (!%p1229_p5)
}
  0x94   : > { %1001 = dma.hbm_to_vmem [thread:$0]  (!%p1522_p6), %s1884_s5, 256, %s326_s15, [#allocation12], %s1906_s1, %s1906_s1, %s1905_s24  }
  0x95   : > { %s1894_s17 = sadd.s32 4294967294, %s1417_s10   ;;  %s43_s25 = sadd.s32 1, %s1413_s9 }
  0x96   : > { %s52_s13 = sadd.s32 1, %s1405_s29  ;;  %p45_p8 = scmp.ge.s32.totalorder %s43_s25, 2 }
  0x97   : > { %p59_p7 = scmp.ne.s32.totalorder %s1405_s29, %s1401_s28  ;;  %p60_p9 = scmp.eq.s32.totalorder %s1417_s10, 0 }
  0x98   : > { %p65_p4 = scmp.ne.s32.totalorder %s1401_s28, %s1397_s27  ;;  %s1930_s25 = smov (%p45_p8, %s43_s25), 0 }
  0x99   : > { %p1651_p1 = por %p60_p9, %p59_p7  ;;  %p1908_p3 = scmp.eq.s32.totalorder %s1508_s11, 0 }
  0x9a   : > { %s47_s24 = ssub.s32 %s1413_s9, %s1930_s25  ;;  %p196_p10 = scmp.eq.s32.totalorder %s1508_s11, 1 }
  0x9b   : > { %p1657_p6 = por %p1908_p3, %p65_p4  ;;  %p50_p11 = scmp.eq.s32.totalorder %s47_s24, 0 }
  0x9c   : > { %p202_p12 = scmp.eq.s32.totalorder %s1894_s17, 1  ;;  %p1666_p13 = por %p196_p10, %p59_p7 }
  0x9d   : > { %p1021_p0 = scmp.lt.s32.totalorder %s1417_s10, 2  ;;  %s339_s16 = sand.u32 1, %s1405_s29  }
  0x9e   : > { %s1910_s1 = scalar_select %p1666_p13, 1, 0 }
  0x9f   : > { %s1672_s14 = scalar_select %p50_p11, %s1405_s29, %s52_s13  }
  0xa0   : > { %p1674_p2 = por %p202_p12, %p65_p4  ;;  %s894_s23 = sshll.u32 %s339_s16, 3 }
  0xa1   : > { %s895_s19 = sshll.u32 %s1413_s9, 7  ;;  %s343_s24 = scalar_lea.vmem [#allocation2], %s894_s23 }
  0xa2   : > { %s1911_s22 = scalar_select %p1674_p2, 1, 0 }
  0xa3   : > { %s1683_s20 = scalar_lea.hbm %s1879_s0, %s895_s19  ;;  %s351_s17 = sshll.u32 %s343_s24, 4  ;;  %s1685_s17 = int_to_ptr.vmem [resolvable:$true] %s351_s17 }
  0xa4   : > { %p1689_p5 = pnand %p1021_p0, %p1651_p1  ;;  %s340_s2 = scalar_lea.sflag [#allocation3], %s339_s16 }
  0xa5   : > { %s1233_s3 = scalar_lea.hbm %s1683_s20, 128  ;;  %s1238_s21 = scalar_lea.hbm %s1879_s0, 256 }
  0xa6   : > { %p1234_p8 = scmp.ne.s32.totalorder %s1683_s20, %s1233_s3  ;;  %p1235_p7 = pneg %p1689_p5 }
  0xa7   : > { %p1239_p1 = scmp.lt.u32.totalorder %s1683_s20, %s1879_s0  ;;  %p1240_p3 = scmp.lt.u32.totalorder %s1238_s21, %s1233_s3 }
  0xa8   : > { %p1236_p9 = pnand %p1235_p7, %p1234_p8  ;;  %p1242_p11 = scmp.lt.u32.totalorder %s1233_s3, %s1683_s20 }
  0xa9   : > { %p1241_p10 = por %p1240_p3, %p1239_p1 }
  0xaa   : > { %p1237_p4 = pneg %p1236_p9 }
  0xab   : > { %p1243_p12 = por %p1242_p11, %p1241_p10 }
  0xad   : > { %p1244_p0 = pnand %p1243_p12, %p1237_p4 }
  0xaf   : > { %1247 = shalt.err (!%p1244_p0)
}
  0xb0   : > { %s1248_s16 = scalar_lea.vmem %s1685_s17, 128  ;;  %s1426_s24 = smov [#allocation2]  }
  0xb1   : > { %p1249_p8 = scmp.ne.s32.totalorder %s1685_s17, %s1248_s16  ;;  %s1253_s23 = sshll.u32 %s1426_s24, 4  ;;  %s1254_s23 = int_to_ptr.vmem [resolvable:$false] %s1253_s23 }
  0xb2   : > { %s1255_s19 = scalar_lea.vmem %s1254_s23, 256  ;;  %p1256_p13 = scmp.lt.s32.totalorder %s1685_s17, %s1254_s23 }
  0xb3   : > { %p1251_p9 = pnand %p1249_p8, %p1235_p7  ;;  %p1257_p1 = scmp.lt.s32.totalorder %s1255_s19, %s1248_s16 }
  0xb5   : > { %p1252_p2 = pneg %p1251_p9  ;;  %p1258_p3 = por %p1257_p1, %p1256_p13 }
  0xb7   : > { %p1259_p10 = pnand %p1258_p3, %p1252_p2 }
  0xb9   : > { %1262 = shalt.err (!%p1259_p10)
}
  0xba   : > { %1005 = dma.hbm_to_vmem [thread:$0]  (!%p1689_p5), %s1683_s20, 128, %s1685_s17, %s340_s2  }
  0xbb   : > { %p1913_p4 = scmp.ne.s32.totalorder %s1899_s12, 0 }
  0xbc   : > { %s1721_s3 = sand.u32 (!%p1913_p4), 1, %s1401_s28  }
  0xbd   : > { %360 = sbr.rel (%p1913_p4) target bundleno = 798 (0x31e), region = 44  ;;  %s897_s21 = sshll.u32 (!%p1913_p4), %s1721_s3, 3 }
  0xbe   : > { %s363_s18 = scalar_lea.sflag (!%p1913_p4), [#allocation3], %s1721_s3  ;;  %s366_s26 = scalar_lea.vmem (!%p1913_p4), [#allocation2], %s897_s21 }
  0xc4   : > { %1372 = dma.done.wait (%p1657_p6), %s363_s18, 128  }
  0xc5   : > { %1374 = vsyncadd (%p1657_p6), %s363_s18, 4294967168  ;;  %p1914_p13 = scmp.eq.s32.totalorder %s1508_s11, 0 }
  0xc7   : > { %1376 = dma.done.wait (%p1914_p13), [#allocation6], 32   ;;  %p1915_p2 = pmov %p1914_p13 }
  0xc9   : > { %1378 = vsyncadd (%p1915_p2), [#allocation6], 4294967264  ;;  %p1916_p5 = pmov %p1915_p2 }
  0xca   : > { %p1917_p7 = pmov %p1915_p2 }
  0xcb   : > { %1380 = dma.done.wait (%p1916_p5), [#allocation9], 512  }
  0xcc   : > { %1382 = vsyncadd (%p1917_p7), [#allocation9], 4294966784  ;;  %p1918_p11 = pmov %p1915_p2 }
  0xcd   : > { %p1919_p12 = pmov %p1915_p2 }
  0xce   : > { %1384 = dma.done.wait (%p1918_p11), [#allocation12], 256  }
  0xcf   : > { %1386 = vsyncadd (%p1919_p12), [#allocation12], 4294967040  ;;  %vm433_vm0 = vcmask 261120   ;;  %v430_v0 = vld [vmem:[%s366_s26] sm:$0xff]  ;;  %v1085_v7 = vld [vmem:[#allocation8] sm:$0xff]   ;;  %v1427_v9 = vmov 0.0  }
  0xd0   : > { %v434_v1 = vsel %vm433_vm0, %v430_v0, 0.0  ;;  %v1086_v8 = vld [vmem:[#allocation10] sm:$0xff]   ;;  %934 = vmatprep.subr.bf16.mxu0 %v1427_v9  ;;  %942 = vmatprep.subr.bf16.mxu1 %v1427_v9  ;;  %v1087_v10 = vld [vmem:[#allocation8 + $0x8] sm:$0xff]   ;;  %v1088_v11 = vld [vmem:[#allocation10 + $0x8] sm:$0xff]   ;;  %vm1428_vm1 = vmmov 0   ;;  %s1750_s2 = sshll.u32 %s1721_s3, 2 }
  0xd1   : > { %435 = vadd.xlane.f32.xlu0 %v434_v1  ;;  %935 = vmatpush3.bf16.msra.mxu0 %v1085_v7  ;;  %v906_v16 = vld [vmem:[#allocation5] ss:$0 sm:$0xff]  ;;  %v907_v18 = vld [vmem:[#allocation7] ss:$0 sm:$0xff]  ;;  %v1089_v21 = vld [vmem:[#allocation11] sm:$0xff]   ;;  %s646_s12 = sand.u32 1, %s1508_s11  }
  0xd2   : > { %943 = vmatpush3.bf16.msra.mxu1 %v1086_v8  ;;  %936 = vmatprep.subr.bf16.mxu0 %v1427_v9  ;;  %v1090_v23 = vld [vmem:[#allocation11 + $0x8] sm:$0xff]   ;;  %s1754_s17 = sshll.u32 %s1409_s30, 6  ;;  %s421_s15 = scalar_lea.vmem [#allocation14], %s1750_s2  ;;  %vm523_vm2 = vcmask 257024  }
  0xd3   : > { %944 = vmatprep.subr.bf16.mxu1 %v1427_v9  ;;  %938 = vmatprep.mubr.msk.bf16.mxu0 %vm1428_vm1, %v1427_v9  ;;  %s680_s20 = sshll.u32 %s421_s15, 4  ;;  %s414_s13 = scalar_lea.vmem [#allocation13], %s1750_s2  ;;  %s1764_s20 = int_to_ptr.vmem [resolvable:$true] %s680_s20 }
  0xd4   : > { %946 = vmatprep.mubr.msk.bf16.mxu1 %vm1428_vm1, %v1427_v9  ;;  %s666_s16 = sshll.u32 %s414_s13, 4  ;;  %s1762_s19 = scalar_lea.hbm %s1886_s7, %s1754_s17  ;;  %s1772_s16 = int_to_ptr.vmem [resolvable:$true] %s666_s16 }
  0xd5   : > { %937 = vmatpush3.bf16.msra.mxu0 %v1087_v10  ;;  %s1770_s21 = scalar_lea.hbm %s1885_s6, %s1754_s17  ;;  %s1776_s18 = scalar_lea.sflag [#allocation15], %s646_s12 }
  0xd6   : > { %945 = vmatpush3.bf16.msra.mxu1 %v1088_v11  ;;  %950 = vmatprep.subr.bf16.mxu0 %v1427_v9  ;;  %s1263_s26 = scalar_lea.vmem %s1764_s20, 64  ;;  %p1920_p0 = scmp.ne.s32.totalorder %s1910_s1, 0 }
  0xd7   : > { %p1264_p6 = scmp.ne.s32.totalorder %s1764_s20, %s1263_s26  ;;  %s1429_s24 = smov [#allocation14]  }
  0xd8   : > { %s1267_s23 = sshll.u32 %s1429_s24, 4  ;;  %s1268_s23 = int_to_ptr.vmem [resolvable:$false] %s1267_s23 }
  0xd9   : > { %p1265_p8 = pnand %p1264_p6, %p1920_p0  ;;  %s1269_s30 = scalar_lea.vmem %s1268_s23, 128 }
  0xda   : > { %p1270_p1 = scmp.lt.s32.totalorder %s1764_s20, %s1268_s23  ;;  %p1271_p3 = scmp.lt.s32.totalorder %s1269_s30, %s1263_s26 }
  0xdb   : > { %p1266_p9 = pneg %p1265_p8 }
  0xdc   : > { %p1272_p10 = por %p1271_p3, %p1270_p1 }
  0xde   : > { %p1273_p4 = pnand %p1272_p10, %p1266_p9 }
 0x15e   : > { %v436_v2 = vpop.xlane.xlu0 %435 }
 0x15f   : > { %v438_v3 = vmul.f32 0.03125, %v436_v2 }
 0x161   : > { %v439_v4 = vsub.f32 %v430_v0, %v438_v3 }
 0x163   : > { %v440_v5 = vmul.f32 %v439_v4, %v439_v4 }
 0x165   : > { %v441_v6 = vsel %vm433_vm0, %v440_v5, 0.0 }
 0x166   : > { %442 = vadd.xlane.f32.xlu0 %v441_v6 }
 0x1f3   : > { %v443_v12 = vpop.xlane.xlu0 %442 }
 0x1f4   : > { %v444_v13 = vmul.f32 0.03125, %v443_v12 }
 0x1f6   : > { %v445_v14 = vadd.f32 1e-05, %v444_v13 }
 0x1f8   : > { %1091 = vrsqrt.f32 %v445_v14 }
 0x202   : > { %v1092_v15 = vpop.eup %1091 }
 0x203   : > { %v447_v17 = vmul.f32 %v1092_v15, %v439_v4 }
 0x205   : > { %v454_v19 = vmul.f32 %v906_v16, %v447_v17 }
 0x207   : > { %v461_v20 = vadd.f32 %v907_v18, %v454_v19 }
 0x209   : > { %v462_v22 = vpack.c.bf16 %v461_v20, %v461_v20 }
 0x20b   : > { %939 = vmatmul.mubr.msk.bf16.vlgmr.msra.gmra.mrb[0].mxu0 %vm433_vm0, %v462_v22  ;;  %947 = vmatmul.mubr.msk.bf16.vlgmr.msra.gmra.mrb[0].mxu1 %vm433_vm0, %v462_v22 }
 0x20c   : > { %951 = vmatpush3.bf16.msra.mxu0 %v1089_v21  ;;  %954 = vmatprep.mubr.msk.bf16.mxu0 %vm1428_vm1, %v1427_v9 }
 0x20d   : > { %952 = vmatprep.subr.bf16.mxu0 %v1427_v9 }
 0x210   : > { %953 = vmatpush3.bf16.msra.mxu0 %v1090_v23 }
 0x213   : > { %955 = vmatmul.mubr.msk.bf16.vlgmr.msra.gmra.mrb[4].mxu0 %vm433_vm0, %v462_v22 }
 0x2de   : > { %v516_v24 = vpop.f32.mrb[0].mxu0  ;;  %v575_v25 = vpop.f32.mrb[0].mxu1 }
 0x2df   : > { %v522_v26 = vpack.c.bf16 %v516_v24, %v516_v24  ;;  %v581_v27 = vpack.c.bf16 %v575_v25, %v575_v25  ;;  %v940_v28 = vpop.f32.mrb[1].mxu0  ;;  %v948_v29 = vpop.f32.mrb[1].mxu1 }
 0x2e0   : > { %v519_v30 = vpop.f32.mrb[2].mxu0  ;;  %v578_v31 = vpop.f32.mrb[2].mxu1 }
 0x2e1   : > { %v941_v32 = vpop.f32.mrb[3].mxu0  ;;  %v949_v33 = vpop.f32.mrb[3].mxu1  ;;  %582 = vst.msk [vmem:[%s421_s15] sm:$0xf] %vm523_vm2, %v581_v27  ;;  %524 = vst.msk [vmem:[%s414_s13] sm:$0xf] %vm523_vm2, %v522_v26 }
 0x2e2   : > { %1276 = shalt.err (!%p1273_p4)
}
 0x2e3   : > { %s1277_s12 = scalar_lea.hbm %s1762_s19, 64  ;;  %s1281_s11 = scalar_lea.hbm %s1886_s7, 128 }
 0x2e4   : > { %p1278_p13 = scmp.ne.s32.totalorder %s1762_s19, %s1277_s12  ;;  %p1282_p7 = scmp.lt.u32.totalorder %s1762_s19, %s1886_s7 }
 0x2e5   : > { %p1283_p11 = scmp.lt.u32.totalorder %s1281_s11, %s1277_s12  ;;  %p1285_p6 = scmp.lt.u32.totalorder %s1277_s12, %s1762_s19 }
 0x2e6   : > { %p1279_p2 = pnand %p1278_p13, %p1920_p0 }
 0x2e7   : > { %p1284_p12 = por %p1283_p11, %p1282_p7 }
 0x2e8   : > { %p1280_p5 = pneg %p1279_p2 }
 0x2e9   : > { %p1286_p8 = por %p1285_p6, %p1284_p12 }
 0x2eb   : > { %p1287_p9 = pnand %p1286_p8, %p1280_p5 }
 0x2ed   : > { %1290 = shalt.err (!%p1287_p9)
}
 0x2ee   : > { %981 = dma.vmem_to_hbm [thread:$0]  (%p1920_p0), %s1764_s20, 64, %s1762_s19, %s1776_s18  }
 0x2ef   : > { %s642_s26 = scalar_lea.sflag [#allocation4], %s1721_s3  ;;  %s1291_s30 = scalar_lea.vmem %s1772_s16, 64 }
 0x2f0   : > { %p1292_p1 = scmp.ne.s32.totalorder %s1772_s16, %s1291_s30  ;;  %s1430_s12 = smov [#allocation13]  }
 0x2f1   : > { %s1295_s15 = sshll.u32 %s1430_s12, 4  ;;  %s1296_s15 = int_to_ptr.vmem [resolvable:$false] %s1295_s15 }
 0x2f2   : > { %p1293_p3 = pnand %p1292_p1, %p1920_p0  ;;  %s1297_s13 = scalar_lea.vmem %s1296_s15, 128 }
 0x2f3   : > { %p1298_p4 = scmp.lt.s32.totalorder %s1772_s16, %s1296_s15  ;;  %p1299_p13 = scmp.lt.s32.totalorder %s1297_s13, %s1291_s30 }
 0x2f4   : > { %p1294_p10 = pneg %p1293_p3 }
 0x2f5   : > { %p1300_p2 = por %p1299_p13, %p1298_p4 }
 0x2f7   : > { %p1301_p5 = pnand %p1300_p2, %p1294_p10 }
 0x2f9   : > { %1304 = shalt.err (!%p1301_p5)
}
 0x2fa   : > { %s1305_s3 = scalar_lea.hbm %s1770_s21, 64  ;;  %s1309_s11 = scalar_lea.hbm %s1885_s6, 128 }
 0x2fb   : > { %p1306_p7 = scmp.ne.s32.totalorder %s1770_s21, %s1305_s3  ;;  %p1310_p6 = scmp.lt.u32.totalorder %s1770_s21, %s1885_s6 }
 0x2fc   : > { %p1311_p8 = scmp.lt.u32.totalorder %s1309_s11, %s1305_s3  ;;  %p1313_p1 = scmp.lt.u32.totalorder %s1305_s3, %s1770_s21 }
 0x2fd   : > { %p1307_p11 = pnand %p1306_p7, %p1920_p0 }
 0x2fe   : > { %p1312_p9 = por %p1311_p8, %p1310_p6 }
 0x2ff   : > { %p1308_p12 = pneg %p1307_p11 }
 0x300   : > { %p1314_p3 = por %p1313_p1, %p1312_p9 }
 0x302   : > { %p1315_p10 = pnand %p1314_p3, %p1308_p12 }
 0x304   : > { %1318 = shalt.err (!%p1315_p10)
}
 0x305   : > { %980 = dma.vmem_to_hbm [thread:$0]  (%p1920_p0), %s1772_s16, 64, %s1770_s21, %s642_s26   ;;  %v633_v34 = vpop.f32.mrb[4].mxu0 }
 0x306   : > { %s428_s30 = scalar_lea.vmem [#allocation16], %s1750_s2  ;;  %v639_v35 = vpack.c.bf16 %v633_v34, %v633_v34  ;;  %v956_v36 = vpop.f32.mrb[5].mxu0  ;;  %s1827_s3 = scalar_lea.hbm %s1887_s8, %s1754_s17 }
 0x307   : > { %s694_s12 = sshll.u32 %s428_s30, 4  ;;  %v636_v37 = vpop.f32.mrb[6].mxu0  ;;  %s1431_s2 = smov [#allocation16]   ;;  %s1829_s12 = int_to_ptr.vmem [resolvable:$true] %s694_s12 }
 0x308   : > { %v957_v38 = vpop.f32.mrb[7].mxu0  ;;  %640 = vst.msk [vmem:[%s428_s30] sm:$0xf] %vm523_vm2, %v639_v35  ;;  %s1319_s16 = scalar_lea.vmem %s1829_s12, 64  ;;  %s1323_s21 = sshll.u32 %s1431_s2, 4  ;;  %s1324_s21 = int_to_ptr.vmem [resolvable:$false] %s1323_s21 }
 0x309   : > { %p1320_p4 = scmp.ne.s32.totalorder %s1829_s12, %s1319_s16  ;;  %s1325_s26 = scalar_lea.vmem %s1324_s21, 128 }
 0x30a   : > { %p1326_p5 = scmp.lt.s32.totalorder %s1829_s12, %s1324_s21  ;;  %p1327_p7 = scmp.lt.s32.totalorder %s1325_s26, %s1319_s16 }
 0x30b   : > { %p1321_p13 = pnand %p1320_p4, %p1920_p0 }
 0x30c   : > { %p1328_p11 = por %p1327_p7, %p1326_p5 }
 0x30d   : > { %p1322_p2 = pneg %p1321_p13 }
 0x30f   : > { %p1329_p12 = pnand %p1328_p11, %p1322_p2 }
 0x311   : > { %1332 = shalt.err (!%p1329_p12)
}
 0x312   : > { %s1333_s17 = scalar_lea.hbm %s1827_s3, 64  ;;  %s1337_s11 = scalar_lea.hbm %s1887_s8, 128 }
 0x313   : > { %p1334_p6 = scmp.ne.s32.totalorder %s1827_s3, %s1333_s17  ;;  %p1338_p1 = scmp.lt.u32.totalorder %s1827_s3, %s1887_s8 }
 0x314   : > { %p1339_p3 = scmp.lt.u32.totalorder %s1337_s11, %s1333_s17  ;;  %p1341_p4 = scmp.lt.u32.totalorder %s1333_s17, %s1827_s3 }
 0x315   : > { %p1335_p8 = pnand %p1334_p6, %p1920_p0 }
 0x316   : > { %p1340_p10 = por %p1339_p3, %p1338_p1 }
 0x317   : > { %p1336_p9 = pneg %p1335_p8 }
 0x318   : > { %p1342_p13 = por %p1341_p4, %p1340_p10 }
 0x31a   : > { %p1343_p2 = pnand %p1342_p13, %p1336_p9 }
 0x31c   : > { %1346 = shalt.err (!%p1343_p2)
}
 0x31d   : > { %982 = dma.vmem_to_hbm [thread:$0]  (%p1920_p0), %s1829_s12, 64, %s1827_s3, %s1776_s18  }
 0x31e PF: > { %s706_s30 = sand.u32 1, %s1397_s27   ;;  %p1921_p5 = scmp.ne.s32.totalorder %s1911_s22, 0 }
 0x31f   : > { %p1922_p7 = scmp.ge.s32.totalorder %s1417_s10, 2  ;;  %s707_s15 = scalar_lea.sflag [#allocation4], %s706_s30 }
 0x321   : > { %p1007_p11 = pnand %p1922_p7, %p1921_p5 }
 0x323   : > { %1388 = dma.done.wait (!%p1007_p11), %s707_s15, 64  }
 0x324   : > { %1390 = vsyncadd (!%p1007_p11), %s707_s15, 4294967232  ;;  %s1923_s13 = sadd.s32 4294967294, %s1417_s10  }
 0x325   : > { %s715_s16 = sand.u32 1, %s1923_s13  }
 0x326   : > { %s716_s2 = scalar_lea.sflag [#allocation15], %s715_s16 }
 0x327   : > { %1392 = dma.done.wait (!%p1007_p11), %s716_s2, 128  }
 0x328   : > { %1394 = vsyncadd (!%p1007_p11), %s716_s2, 4294967168  ;;  %s31_s10 = sadd.s32 1, %s1417_s10   ;;  %s1924_s27 = smov %s1401_s28 }
 0x329   : > { %p28_p0 = scmp.ge.s32.totalorder %s31_s10, 4   ;;  %s1925_s28 = smov %s1405_s29 }
 0x32a   : > { %s1926_s29 = smov %s1672_s14  ;;  %s1927_s30 = smov %s1413_s9 }
 0x32b   : > { %s1928_s9 = smov %s1930_s25  ;;  %30 = sbr.rel (!%p28_p0) target bundleno = 15 (0xf), region = 141 }
 0x332   :  { %730 = vsyncpa [#allocation3], 1 }
 0x333   :  { %732 = vsyncpa [#allocation3 + $0x1], 1 }
 0x334   :  { %733 = vsyncpa [#allocation6], 1 }
 0x335   :  { %734 = vsyncpa [#allocation9], 1 }
 0x336   :  { %735 = vsyncpa [#allocation12], 1 }
 0x337   :  { %736 = vsyncpa [#allocation4], 1 }
 0x338   :  { %738 = vsyncpa [#allocation4 + $0x1], 1 }
 0x339   :  { %739 = vsyncpa [#allocation15], 1 }
 0x33a   :  { %741 = vsyncpa [#allocation15 + $0x1], 1 }

</bundles_post_ra>
